<compile_context>
chip_gen: v6e
topology: v6e:2x2x1
jax: 0.10.0
libtpu: 0.0.40
codegen_flags: <defaults>
</compile_context>

<pallas_src>
import math
import jax
import jax.numpy as jnp
from jax.experimental import pallas as pl
from jax.experimental.pallas import tpu as pltpu  # noqa: F401  (kept for TPU backend)


# ---------------------------------------------------------------------------
# Model config (tiny synthetic BERT)
# ---------------------------------------------------------------------------
VOCAB = 100
MAX_POS = 16
HIDDEN = 32
N_LAYERS = 2
N_HEADS = 2
HEAD_DIM = HIDDEN // N_HEADS
INTERMEDIATE = 64
NUM_CLASSES = 4
LN_EPS = 1e-12
ATTN_SCALE = 1.0 / math.sqrt(HEAD_DIM)


# ---------------------------------------------------------------------------
# Helpers
# ---------------------------------------------------------------------------
def _full_spec(shape):
    """Whole-array block for a grid-less pallas_call."""
    nd = len(shape)
    return pl.BlockSpec(shape, lambda: (0,) * nd)


def _layer_norm(x, g, b):
    mu = jnp.mean(x, axis=-1, keepdims=True)
    var = jnp.mean(jnp.square(x - mu), axis=-1, keepdims=True)
    return (x - mu) * jax.lax.rsqrt(var + LN_EPS) * g + b


def _gelu(x):
    # tanh-approx GELU.  TODO(synk): PyTorch nn.GELU defaults to exact erf; the
    # tanh approximation diverges by <~1e-3 (kept: erf lowering is not guaranteed in Mosaic).
    return 0.5 * x * (1.0 + jnp.tanh(0.7978845608028654 * (x + 0.044715 * x * x * x)))


# ---------------------------------------------------------------------------
# Kernel 1: embeddings (word + pos + type) add fused with LayerNorm
# ---------------------------------------------------------------------------
def _embed_ln_kernel(word_ref, pt_ref, g_ref, b_ref, o_ref):
    x = word_ref[...].astype(jnp.float32) + pt_ref[...]          # [B, S, H]
    o_ref[...] = _layer_norm(x, g_ref[...], b_ref[...]).astype(o_ref.dtype)


def embed_layernorm(word, pos_type, gamma, beta):
    B, S, H = word.shape
    return pl.pallas_call(
        _embed_ln_kernel,
        out_shape=jax.ShapeDtypeStruct((B, S, H), jnp.float32),
        in_specs=[_full_spec((B, S, H)), _full_spec((1, S, H)),
                  _full_spec((1, 1, H)), _full_spec((1, 1, H))],
        out_specs=_full_spec((B, S, H)),
    )(word, pos_type, gamma, beta)


# ---------------------------------------------------------------------------
# Kernel 2: fully fused encoder layer
#   QKV (one matmul) -> per-head attention -> out proj -> +res, LN1
#   -> FFN(GELU) -> +res, LN2
# ---------------------------------------------------------------------------
def _encoder_layer_kernel_factory(B, S):
    H, NH, DH = HIDDEN, N_HEADS, HEAD_DIM

    def kernel(x_ref, bias_ref, wqkv_ref, bqkv_ref, wo_ref, bo_ref,
               ln1g_ref, ln1b_ref, wff1_ref, bff1_ref, wff2_ref, bff2_ref,
               ln2g_ref, ln2b_ref, o_ref):
        x = x_ref[...].astype(jnp.float32)                        # [B*S, H]

        # ---- fused Q|K|V projection: a single [B*S, H] @ [H, 3H] matmul ----
        qkv = jnp.dot(x, wqkv_ref[...],
                      preferred_element_type=jnp.float32) + bqkv_ref[...]

        # ---- attention, per (batch, head), statically unrolled (B*NH tiny matmuls),
        #      heads read as lane slices -> no split_heads transposes / HBM copies ----
        ctx_rows = []
        for b in range(B):
            r0 = b * S
            bias_b = bias_ref[b:b + 1, :]                         # [1, S] additive mask bias
            heads = []
            for h in range(NH):
                c0 = h * DH
                q = qkv[r0:r0 + S, c0:c0 + DH]                    # [S, DH]
                k = qkv[r0:r0 + S, H + c0:H + c0 + DH]            # [S, DH]
                v = qkv[r0:r0 + S, 2 * H + c0:2 * H + c0 + DH]    # [S, DH]
                s = jax.lax.dot_general(
                    q, k, (((1,), (1,)), ((), ())),
                    preferred_element_type=jnp.float32) * ATTN_SCALE   # [S, S]
                s = s + bias_b
                s = s - jnp.max(s, axis=-1, keepdims=True)
                p = jnp.exp(s)
                p = p * pl.reciprocal(jnp.sum(p, axis=-1, keepdims=True), approx=True)
                heads.append(jnp.dot(p, v, preferred_element_type=jnp.float32))
            ctx_rows.append(jnp.concatenate(heads, axis=-1))      # [S, H]
        ctx = jnp.concatenate(ctx_rows, axis=0)                   # [B*S, H]

        # ---- output projection + residual + LayerNorm1 ----
        attn = jnp.dot(ctx, wo_ref[...],
                       preferred_element_type=jnp.float32) + bo_ref[...]
        x1 = _layer_norm(attn + x, ln1g_ref[...], ln1b_ref[...])

        # ---- feed-forward + residual + LayerNorm2 ----
        hmid = _gelu(jnp.dot(x1, wff1_ref[...],
                             preferred_element_type=jnp.float32) + bff1_ref[...])
        y = jnp.dot(hmid, wff2_ref[...],
                    preferred_element_type=jnp.float32) + bff2_ref[...]
        o_ref[...] = _layer_norm(y + x1, ln2g_ref[...], ln2b_ref[...]).astype(o_ref.dtype)

    return kernel


def encoder_layer(x, bias, layer):
    BS, H = x.shape
    B = bias.shape[0]
    S = BS // B
    in_arrays = [x, bias,
                 layer["wqkv"], layer["bqkv"], layer["wo"], layer["bo"],
                 layer["ln1_g"], layer["ln1_b"],
                 layer["w_ff1"], layer["b_ff1"], layer["w_ff2"], layer["b_ff2"],
                 layer["ln2_g"], layer["ln2_b"]]
    return pl.pallas_call(
        _encoder_layer_kernel_factory(B, S),
        out_shape=jax.ShapeDtypeStruct((BS, H), jnp.float32),
        in_specs=[_full_spec(a.shape) for a in in_arrays],
        out_specs=_full_spec((BS, H)),
    )(*in_arrays)


# ---------------------------------------------------------------------------
# Kernel 3: pooler (tanh linear on CLS rows) + dropout(eval) + fc + softmax
# ---------------------------------------------------------------------------
def _pool_cls_kernel_factory(B, S):
    def kernel(x_ref, pw_ref, pb_ref, fw_ref, fb_ref, o_ref):
        # gather CLS rows (row b*S) straight from the flat [B*S, H] activations
        cls = jnp.concatenate([x_ref[b * S:b * S + 1, :] for b in range(B)], axis=0)
        pooled = jnp.tanh(
            jnp.dot(cls.astype(jnp.float32), pw_ref[...],
                    preferred_element_type=jnp.float32) + pb_ref[...])
        # dropout1(p=0.2): identity (inference / eval mode)
        logits = jnp.dot(pooled, fw_ref[...],
                         preferred_element_type=jnp.float32) + fb_ref[...]
        logits = logits - jnp.max(logits, axis=-1, keepdims=True)
        e = jnp.exp(logits)
        # exact reciprocal here so output rows sum to 1 to tight tolerance
        o_ref[...] = (e * pl.reciprocal(jnp.sum(e, axis=-1, keepdims=True),
                                        approx=False)).astype(o_ref.dtype)
    return kernel


def pooler_classifier(x, B, S, pool_w, pool_b, fc_w, fc_b):
    C = fc_w.shape[1]
    return pl.pallas_call(
        _pool_cls_kernel_factory(B, S),
        out_shape=jax.ShapeDtypeStruct((B, C), jnp.float32),
        in_specs=[_full_spec(x.shape), _full_spec(pool_w.shape), _full_spec(pool_b.shape),
                  _full_spec(fc_w.shape), _full_spec(fc_b.shape)],
        out_specs=_full_spec((B, C)),
    )(x, pool_w, pool_b, fc_w, fc_b)


# ---------------------------------------------------------------------------
# Params (QKV weights pre-fused into a single [H, 3H] matrix)
# ---------------------------------------------------------------------------
def init_params(key):
    def nrm(k, shape, scale=0.02):
        return scale * jax.random.normal(k, shape, dtype=jnp.float32)

    keys = iter(jax.random.split(key, 8 + N_LAYERS * 16))
    p = {}
    p["word_emb"] = nrm(next(keys), (VOCAB, HIDDEN))
    p["pos_emb"] = nrm(next(keys), (MAX_POS, HIDDEN))
    p["type_emb"] = nrm(next(keys), (2, HIDDEN))
    p["emb_ln_g"] = jnp.ones((1, HIDDEN), jnp.float32)
    p["emb_ln_b"] = jnp.zeros((1, HIDDEN), jnp.float32)

    p["layers"] = []
    for _ in range(N_LAYERS):
        l = {}
        wq = nrm(next(keys), (HIDDEN, HIDDEN))
        wk = nrm(next(keys), (HIDDEN, HIDDEN))
        wv = nrm(next(keys), (HIDDEN, HIDDEN))
        l["wqkv"] = jnp.concatenate([wq, wk, wv], axis=1)          # [H, 3H]
        l["bqkv"] = jnp.zeros((1, 3 * HIDDEN), jnp.float32)
        l["wo"] = nrm(next(keys), (HIDDEN, HIDDEN))
        l["bo"] = jnp.zeros((1, HIDDEN), jnp.float32)
        l["w_ff1"] = nrm(next(keys), (HIDDEN, INTERMEDIATE))
        l["b_ff1"] = jnp.zeros((1, INTERMEDIATE), jnp.float32)
        l["w_ff2"] = nrm(next(keys), (INTERMEDIATE, HIDDEN))
        l["b_ff2"] = jnp.zeros((1, HIDDEN), jnp.float32)
        l["ln1_g"] = jnp.ones((1, HIDDEN), jnp.float32)
        l["ln1_b"] = jnp.zeros((1, HIDDEN), jnp.float32)
        l["ln2_g"] = jnp.ones((1, HIDDEN), jnp.float32)
        l["ln2_b"] = jnp.zeros((1, HIDDEN), jnp.float32)
        p["layers"].append(l)

    p["pool_w"] = nrm(next(keys), (HIDDEN, HIDDEN))
    p["pool_b"] = jnp.zeros((1, HIDDEN), jnp.float32)
    p["fc1_w"] = nrm(next(keys), (HIDDEN, NUM_CLASSES))
    p["fc1_b"] = jnp.zeros((1, NUM_CLASSES), jnp.float32)
    return p


# ---------------------------------------------------------------------------
# Forward pass
# ---------------------------------------------------------------------------
def bert_classifier_forward(params, input_ids, attention_mask):
    """input_ids: [B, S] int32, attention_mask: [B, S] (1/0) -> [B, NUM_CLASSES]."""
    B, S = input_ids.shape

    # embeddings: gather is JAX glue; (word + pos + type) add + LN fused in Pallas
    word = jnp.take(params["word_emb"], input_ids, axis=0)                    # [B, S, H]
    pos_type = (params["pos_emb"][:S] + params["type_emb"][0])[None, :, :]    # [1, S, H]
    x = embed_layernorm(word, pos_type,
                        params["emb_ln_g"].reshape(1, 1, HIDDEN),
                        params["emb_ln_b"].reshape(1, 1, HIDDEN))
    x = x.reshape(B * S, HIDDEN)
    # embedding dropout: identity (eval mode)

    # additive attention-mask bias, computed once in the wrapper
    mask_bias = (1.0 - attention_mask.astype(jnp.float32)) * (-10000.0)       # [B, S]

    for layer in params["layers"]:
        x = encoder_layer(x, mask_bias, layer)                                # [B*S, H]

    # pooler(tanh) + dropout1(eval identity) + fc1 + softmax(dim=1), fused
    return pooler_classifier(x, B, S, params["pool_w"], params["pool_b"],
                             params["fc1_w"], params["fc1_b"])


# ---------------------------------------------------------------------------
# Main
# ---------------------------------------------------------------------------
if __name__ == "__main__":
    key = jax.random.PRNGKey(0)
    pkey, ikey = jax.random.split(key)
    params = init_params(pkey)

    B, S = 2, 8
    input_ids = jax.random.randint(ikey, (B, S), 0, VOCAB, dtype=jnp.int32)
    attention_mask = jnp.array(
        [[1, 1, 1, 1, 1, 1, 1, 1],
         [1, 1, 1, 1, 1, 0, 0, 0]], dtype=jnp.int32)

    fwd = jax.jit(bert_classifier_forward)
    out = fwd(params, input_ids, attention_mask)
    out = jax.block_until_ready(out)

    assert out.shape == (B, NUM_CLASSES)
    assert bool(jnp.all(jnp.isfinite(out)))
    # softmax rows sum to 1
    assert bool(jnp.allclose(jnp.sum(out, axis=1), 1.0, atol=1e-5))
    print("KERNEL_OK")
</pallas_src>

<mosaic_0001>
module attributes {stable_mosaic.version = 11 : i64} {
  func.func @kernel(%arg0: memref<16x32xf32, #tpu.memory_space<vmem>>, %arg1: memref<2x8xf32, #tpu.memory_space<vmem>>, %arg2: memref<32x96xf32, #tpu.memory_space<vmem>>, %arg3: memref<1x96xf32, #tpu.memory_space<vmem>>, %arg4: memref<32x32xf32, #tpu.memory_space<vmem>>, %arg5: memref<1x32xf32, #tpu.memory_space<vmem>>, %arg6: memref<1x32xf32, #tpu.memory_space<vmem>>, %arg7: memref<1x32xf32, #tpu.memory_space<vmem>>, %arg8: memref<32x64xf32, #tpu.memory_space<vmem>>, %arg9: memref<1x64xf32, #tpu.memory_space<vmem>>, %arg10: memref<64x32xf32, #tpu.memory_space<vmem>>, %arg11: memref<1x32xf32, #tpu.memory_space<vmem>>, %arg12: memref<1x32xf32, #tpu.memory_space<vmem>>, %arg13: memref<1x32xf32, #tpu.memory_space<vmem>>, %arg14: memref<16x32xf32, #tpu.memory_space<vmem>>) attributes {dimension_semantics = [], scalar_prefetch = 0 : i64, scratch_operands = 0 : i64, tpu.core_type = #tpu.core_type<tc>} {
    %c0 = arith.constant 0 : index
    %c0_0 = arith.constant 0 : index
    %0 = vector.load %arg0[%c0, %c0_0] : memref<16x32xf32, #tpu.memory_space<vmem>>, vector<16x32xf32>
    %c0_1 = arith.constant 0 : index
    %c0_2 = arith.constant 0 : index
    %1 = vector.load %arg2[%c0_1, %c0_2] : memref<32x96xf32, #tpu.memory_space<vmem>>, vector<32x96xf32>
    %cst = arith.constant dense<0.000000e+00> : vector<16x96xf32>
    %2 = tpu.matmul %0, %1, %cst {dimension_numbers = #tpu.dot_dimension_numbers<[1], [0], [0], [1], [0, 0, 1, 1], [], []>} : vector<16x32xf32>, vector<32x96xf32>, vector<16x96xf32> -> vector<16x96xf32>
    %c0_3 = arith.constant 0 : index
    %c0_4 = arith.constant 0 : index
    %3 = vector.load %arg3[%c0_3, %c0_4] : memref<1x96xf32, #tpu.memory_space<vmem>>, vector<1x96xf32>
    %4 = vector.broadcast %3 : vector<1x96xf32> to vector<16x96xf32>
    %5 = arith.addf %2, %4 : vector<16x96xf32>
    %c0_5 = arith.constant 0 : index
    %c0_6 = arith.constant 0 : index
    %6 = vector.load %arg1[%c0_5, %c0_6] : memref<2x8xf32, #tpu.memory_space<vmem>>, vector<1x8xf32>
    %7 = vector.extract_strided_slice %5 {offsets = [0, 0], sizes = [8, 16], strides = [1, 1]} : vector<16x96xf32> to vector<8x16xf32>
    %8 = vector.extract_strided_slice %5 {offsets = [0, 32], sizes = [8, 16], strides = [1, 1]} : vector<16x96xf32> to vector<8x16xf32>
    %9 = vector.extract_strided_slice %5 {offsets = [0, 64], sizes = [8, 16], strides = [1, 1]} : vector<16x96xf32> to vector<8x16xf32>
    %cst_7 = arith.constant dense<0.000000e+00> : vector<8x8xf32>
    %10 = tpu.matmul %7, %8, %cst_7 {dimension_numbers = #tpu.dot_dimension_numbers<[1], [1], [0], [0], [0, 0, 1, 0], [], []>} : vector<8x16xf32>, vector<8x16xf32>, vector<8x8xf32> -> vector<8x8xf32>
    %cst_8 = arith.constant 2.500000e-01 : f32
    %11 = vector.broadcast %cst_8 : f32 to vector<8x8xf32>
    %12 = arith.mulf %10, %11 : vector<8x8xf32>
    %13 = vector.broadcast %6 : vector<1x8xf32> to vector<8x8xf32>
    %14 = arith.addf %12, %13 : vector<8x8xf32>
    %cst_9 = arith.constant dense<0xFF800000> : vector<8xf32>
    %15 = vector.multi_reduction <maximumf>, %14, %cst_9 [1] : vector<8x8xf32> to vector<8xf32>
    %16 = vector.shape_cast %15 : vector<8xf32> to vector<8x1xf32>
    %17 = vector.broadcast %16 : vector<8x1xf32> to vector<8x8xf32>
    %18 = arith.subf %14, %17 : vector<8x8xf32>
    %19 = math.exp %18 : vector<8x8xf32>
    %cst_10 = arith.constant dense<0.000000e+00> : vector<8xf32>
    %20 = vector.multi_reduction <add>, %19, %cst_10 [1] : vector<8x8xf32> to vector<8xf32>
    %21 = vector.shape_cast %20 : vector<8xf32> to vector<8x1xf32>
    %22 = tpu.reciprocal %21 {approx = true} : vector<8x1xf32> -> vector<8x1xf32>
    %23 = vector.broadcast %22 : vector<8x1xf32> to vector<8x8xf32>
    %24 = arith.mulf %19, %23 : vector<8x8xf32>
    %cst_11 = arith.constant dense<0.000000e+00> : vector<8x16xf32>
    %25 = tpu.matmul %24, %9, %cst_11 {dimension_numbers = #tpu.dot_dimension_numbers<[1], [0], [0], [1], [0, 0, 1, 1], [], []>} : vector<8x8xf32>, vector<8x16xf32>, vector<8x16xf32> -> vector<8x16xf32>
    %26 = vector.extract_strided_slice %5 {offsets = [0, 16], sizes = [8, 16], strides = [1, 1]} : vector<16x96xf32> to vector<8x16xf32>
    %27 = vector.extract_strided_slice %5 {offsets = [0, 48], sizes = [8, 16], strides = [1, 1]} : vector<16x96xf32> to vector<8x16xf32>
    %28 = vector.extract_strided_slice %5 {offsets = [0, 80], sizes = [8, 16], strides = [1, 1]} : vector<16x96xf32> to vector<8x16xf32>
    %cst_12 = arith.constant dense<0.000000e+00> : vector<8x8xf32>
    %29 = tpu.matmul %26, %27, %cst_12 {dimension_numbers = #tpu.dot_dimension_numbers<[1], [1], [0], [0], [0, 0, 1, 0], [], []>} : vector<8x16xf32>, vector<8x16xf32>, vector<8x8xf32> -> vector<8x8xf32>
    %cst_13 = arith.constant 2.500000e-01 : f32
    %30 = vector.broadcast %cst_13 : f32 to vector<8x8xf32>
    %31 = arith.mulf %29, %30 : vector<8x8xf32>
    %32 = vector.broadcast %6 : vector<1x8xf32> to vector<8x8xf32>
    %33 = arith.addf %31, %32 : vector<8x8xf32>
    %cst_14 = arith.constant dense<0xFF800000> : vector<8xf32>
    %34 = vector.multi_reduction <maximumf>, %33, %cst_14 [1] : vector<8x8xf32> to vector<8xf32>
    %35 = vector.shape_cast %34 : vector<8xf32> to vector<8x1xf32>
    %36 = vector.broadcast %35 : vector<8x1xf32> to vector<8x8xf32>
    %37 = arith.subf %33, %36 : vector<8x8xf32>
    %38 = math.exp %37 : vector<8x8xf32>
    %cst_15 = arith.constant dense<0.000000e+00> : vector<8xf32>
    %39 = vector.multi_reduction <add>, %38, %cst_15 [1] : vector<8x8xf32> to vector<8xf32>
    %40 = vector.shape_cast %39 : vector<8xf32> to vector<8x1xf32>
    %41 = tpu.reciprocal %40 {approx = true} : vector<8x1xf32> -> vector<8x1xf32>
    %42 = vector.broadcast %41 : vector<8x1xf32> to vector<8x8xf32>
    %43 = arith.mulf %38, %42 : vector<8x8xf32>
    %cst_16 = arith.constant dense<0.000000e+00> : vector<8x16xf32>
    %44 = tpu.matmul %43, %28, %cst_16 {dimension_numbers = #tpu.dot_dimension_numbers<[1], [0], [0], [1], [0, 0, 1, 1], [], []>} : vector<8x8xf32>, vector<8x16xf32>, vector<8x16xf32> -> vector<8x16xf32>
    %45 = tpu.concatenate %25, %44 in 1 : vector<8x16xf32>, vector<8x16xf32> -> vector<8x32xf32>
    %c1 = arith.constant 1 : index
    %c0_17 = arith.constant 0 : index
    %46 = vector.load %arg1[%c1, %c0_17] : memref<2x8xf32, #tpu.memory_space<vmem>>, vector<1x8xf32>
    %47 = vector.extract_strided_slice %5 {offsets = [8, 0], sizes = [8, 16], strides = [1, 1]} : vector<16x96xf32> to vector<8x16xf32>
    %48 = vector.extract_strided_slice %5 {offsets = [8, 32], sizes = [8, 16], strides = [1, 1]} : vector<16x96xf32> to vector<8x16xf32>
    %49 = vector.extract_strided_slice %5 {offsets = [8, 64], sizes = [8, 16], strides = [1, 1]} : vector<16x96xf32> to vector<8x16xf32>
    %cst_18 = arith.constant dense<0.000000e+00> : vector<8x8xf32>
    %50 = tpu.matmul %47, %48, %cst_18 {dimension_numbers = #tpu.dot_dimension_numbers<[1], [1], [0], [0], [0, 0, 1, 0], [], []>} : vector<8x16xf32>, vector<8x16xf32>, vector<8x8xf32> -> vector<8x8xf32>
    %cst_19 = arith.constant 2.500000e-01 : f32
    %51 = vector.broadcast %cst_19 : f32 to vector<8x8xf32>
    %52 = arith.mulf %50, %51 : vector<8x8xf32>
    %53 = vector.broadcast %46 : vector<1x8xf32> to vector<8x8xf32>
    %54 = arith.addf %52, %53 : vector<8x8xf32>
    %cst_20 = arith.constant dense<0xFF800000> : vector<8xf32>
    %55 = vector.multi_reduction <maximumf>, %54, %cst_20 [1] : vector<8x8xf32> to vector<8xf32>
    %56 = vector.shape_cast %55 : vector<8xf32> to vector<8x1xf32>
    %57 = vector.broadcast %56 : vector<8x1xf32> to vector<8x8xf32>
    %58 = arith.subf %54, %57 : vector<8x8xf32>
    %59 = math.exp %58 : vector<8x8xf32>
    %cst_21 = arith.constant dense<0.000000e+00> : vector<8xf32>
    %60 = vector.multi_reduction <add>, %59, %cst_21 [1] : vector<8x8xf32> to vector<8xf32>
    %61 = vector.shape_cast %60 : vector<8xf32> to vector<8x1xf32>
    %62 = tpu.reciprocal %61 {approx = true} : vector<8x1xf32> -> vector<8x1xf32>
    %63 = vector.broadcast %62 : vector<8x1xf32> to vector<8x8xf32>
    %64 = arith.mulf %59, %63 : vector<8x8xf32>
    %cst_22 = arith.constant dense<0.000000e+00> : vector<8x16xf32>
    %65 = tpu.matmul %64, %49, %cst_22 {dimension_numbers = #tpu.dot_dimension_numbers<[1], [0], [0], [1], [0, 0, 1, 1], [], []>} : vector<8x8xf32>, vector<8x16xf32>, vector<8x16xf32> -> vector<8x16xf32>
    %66 = vector.extract_strided_slice %5 {offsets = [8, 16], sizes = [8, 16], strides = [1, 1]} : vector<16x96xf32> to vector<8x16xf32>
    %67 = vector.extract_strided_slice %5 {offsets = [8, 48], sizes = [8, 16], strides = [1, 1]} : vector<16x96xf32> to vector<8x16xf32>
    %68 = vector.extract_strided_slice %5 {offsets = [8, 80], sizes = [8, 16], strides = [1, 1]} : vector<16x96xf32> to vector<8x16xf32>
    %cst_23 = arith.constant dense<0.000000e+00> : vector<8x8xf32>
    %69 = tpu.matmul %66, %67, %cst_23 {dimension_numbers = #tpu.dot_dimension_numbers<[1], [1], [0], [0], [0, 0, 1, 0], [], []>} : vector<8x16xf32>, vector<8x16xf32>, vector<8x8xf32> -> vector<8x8xf32>
    %cst_24 = arith.constant 2.500000e-01 : f32
    %70 = vector.broadcast %cst_24 : f32 to vector<8x8xf32>
    %71 = arith.mulf %69, %70 : vector<8x8xf32>
    %72 = vector.broadcast %46 : vector<1x8xf32> to vector<8x8xf32>
    %73 = arith.addf %71, %72 : vector<8x8xf32>
    %cst_25 = arith.constant dense<0xFF800000> : vector<8xf32>
    %74 = vector.multi_reduction <maximumf>, %73, %cst_25 [1] : vector<8x8xf32> to vector<8xf32>
    %75 = vector.shape_cast %74 : vector<8xf32> to vector<8x1xf32>
    %76 = vector.broadcast %75 : vector<8x1xf32> to vector<8x8xf32>
    %77 = arith.subf %73, %76 : vector<8x8xf32>
    %78 = math.exp %77 : vector<8x8xf32>
    %cst_26 = arith.constant dense<0.000000e+00> : vector<8xf32>
    %79 = vector.multi_reduction <add>, %78, %cst_26 [1] : vector<8x8xf32> to vector<8xf32>
    %80 = vector.shape_cast %79 : vector<8xf32> to vector<8x1xf32>
    %81 = tpu.reciprocal %80 {approx = true} : vector<8x1xf32> -> vector<8x1xf32>
    %82 = vector.broadcast %81 : vector<8x1xf32> to vector<8x8xf32>
    %83 = arith.mulf %78, %82 : vector<8x8xf32>
    %cst_27 = arith.constant dense<0.000000e+00> : vector<8x16xf32>
    %84 = tpu.matmul %83, %68, %cst_27 {dimension_numbers = #tpu.dot_dimension_numbers<[1], [0], [0], [1], [0, 0, 1, 1], [], []>} : vector<8x8xf32>, vector<8x16xf32>, vector<8x16xf32> -> vector<8x16xf32>
    %85 = tpu.concatenate %65, %84 in 1 : vector<8x16xf32>, vector<8x16xf32> -> vector<8x32xf32>
    %86 = tpu.concatenate %45, %85 in 0 : vector<8x32xf32>, vector<8x32xf32> -> vector<16x32xf32>
    %c0_28 = arith.constant 0 : index
    %c0_29 = arith.constant 0 : index
    %87 = vector.load %arg4[%c0_28, %c0_29] : memref<32x32xf32, #tpu.memory_space<vmem>>, vector<32x32xf32>
    %cst_30 = arith.constant dense<0.000000e+00> : vector<16x32xf32>
    %88 = tpu.matmul %86, %87, %cst_30 {dimension_numbers = #tpu.dot_dimension_numbers<[1], [0], [0], [1], [0, 0, 1, 1], [], []>} : vector<16x32xf32>, vector<32x32xf32>, vector<16x32xf32> -> vector<16x32xf32>
    %c0_31 = arith.constant 0 : index
    %c0_32 = arith.constant 0 : index
    %89 = vector.load %arg5[%c0_31, %c0_32] : memref<1x32xf32, #tpu.memory_space<vmem>>, vector<1x32xf32>
    %90 = vector.broadcast %89 : vector<1x32xf32> to vector<16x32xf32>
    %91 = arith.addf %88, %90 : vector<16x32xf32>
    %92 = arith.addf %91, %0 : vector<16x32xf32>
    %c0_33 = arith.constant 0 : index
    %c0_34 = arith.constant 0 : index
    %93 = vector.load %arg6[%c0_33, %c0_34] : memref<1x32xf32, #tpu.memory_space<vmem>>, vector<1x32xf32>
    %c0_35 = arith.constant 0 : index
    %c0_36 = arith.constant 0 : index
    %94 = vector.load %arg7[%c0_35, %c0_36] : memref<1x32xf32, #tpu.memory_space<vmem>>, vector<1x32xf32>
    %cst_37 = arith.constant dense<0.000000e+00> : vector<16xf32>
    %95 = vector.multi_reduction <add>, %92, %cst_37 [1] : vector<16x32xf32> to vector<16xf32>
    %96 = vector.shape_cast %95 : vector<16xf32> to vector<16x1xf32>
    %cst_38 = arith.constant 3.200000e+01 : f32
    %97 = vector.broadcast %cst_38 : f32 to vector<16x1xf32>
    %98 = arith.divf %96, %97 : vector<16x1xf32>
    %99 = vector.broadcast %98 : vector<16x1xf32> to vector<16x32xf32>
    %100 = arith.subf %92, %99 : vector<16x32xf32>
    %101 = arith.mulf %100, %100 : vector<16x32xf32>
    %cst_39 = arith.constant dense<0.000000e+00> : vector<16xf32>
    %102 = vector.multi_reduction <add>, %101, %cst_39 [1] : vector<16x32xf32> to vector<16xf32>
    %103 = vector.shape_cast %102 : vector<16xf32> to vector<16x1xf32>
    %cst_40 = arith.constant 3.200000e+01 : f32
    %104 = vector.broadcast %cst_40 : f32 to vector<16x1xf32>
    %105 = arith.divf %103, %104 : vector<16x1xf32>
    %106 = vector.broadcast %98 : vector<16x1xf32> to vector<16x32xf32>
    %107 = arith.subf %92, %106 : vector<16x32xf32>
    %cst_41 = arith.constant 9.99999996E-13 : f32
    %108 = vector.broadcast %cst_41 : f32 to vector<16x1xf32>
    %109 = arith.addf %105, %108 : vector<16x1xf32>
    %110 = math.rsqrt %109 : vector<16x1xf32>
    %111 = vector.broadcast %110 : vector<16x1xf32> to vector<16x32xf32>
    %112 = arith.mulf %107, %111 : vector<16x32xf32>
    %113 = vector.broadcast %93 : vector<1x32xf32> to vector<16x32xf32>
    %114 = arith.mulf %112, %113 : vector<16x32xf32>
    %115 = vector.broadcast %94 : vector<1x32xf32> to vector<16x32xf32>
    %116 = arith.addf %114, %115 : vector<16x32xf32>
    %c0_42 = arith.constant 0 : index
    %c0_43 = arith.constant 0 : index
    %117 = vector.load %arg8[%c0_42, %c0_43] : memref<32x64xf32, #tpu.memory_space<vmem>>, vector<32x64xf32>
    %cst_44 = arith.constant dense<0.000000e+00> : vector<16x64xf32>
    %118 = tpu.matmul %116, %117, %cst_44 {dimension_numbers = #tpu.dot_dimension_numbers<[1], [0], [0], [1], [0, 0, 1, 1], [], []>} : vector<16x32xf32>, vector<32x64xf32>, vector<16x64xf32> -> vector<16x64xf32>
    %c0_45 = arith.constant 0 : index
    %c0_46 = arith.constant 0 : index
    %119 = vector.load %arg9[%c0_45, %c0_46] : memref<1x64xf32, #tpu.memory_space<vmem>>, vector<1x64xf32>
    %120 = vector.broadcast %119 : vector<1x64xf32> to vector<16x64xf32>
    %121 = arith.addf %118, %120 : vector<16x64xf32>
    %cst_47 = arith.constant 5.000000e-01 : f32
    %122 = vector.broadcast %cst_47 : f32 to vector<16x64xf32>
    %123 = arith.mulf %122, %121 : vector<16x64xf32>
    %cst_48 = arith.constant 4.471500e-02 : f32
    %124 = vector.broadcast %cst_48 : f32 to vector<16x64xf32>
    %125 = arith.mulf %124, %121 : vector<16x64xf32>
    %126 = arith.mulf %125, %121 : vector<16x64xf32>
    %127 = arith.mulf %126, %121 : vector<16x64xf32>
    %128 = arith.addf %121, %127 : vector<16x64xf32>
    %cst_49 = arith.constant 0.797884583 : f32
    %129 = vector.broadcast %cst_49 : f32 to vector<16x64xf32>
    %130 = arith.mulf %129, %128 : vector<16x64xf32>
    %131 = math.tanh %130 : vector<16x64xf32>
    %cst_50 = arith.constant 1.000000e+00 : f32
    %132 = vector.broadcast %cst_50 : f32 to vector<16x64xf32>
    %133 = arith.addf %132, %131 : vector<16x64xf32>
    %134 = arith.mulf %123, %133 : vector<16x64xf32>
    %c0_51 = arith.constant 0 : index
    %c0_52 = arith.constant 0 : index
    %135 = vector.load %arg10[%c0_51, %c0_52] : memref<64x32xf32, #tpu.memory_space<vmem>>, vector<64x32xf32>
    %cst_53 = arith.constant dense<0.000000e+00> : vector<16x32xf32>
    %136 = tpu.matmul %134, %135, %cst_53 {dimension_numbers = #tpu.dot_dimension_numbers<[1], [0], [0], [1], [0, 0, 1, 1], [], []>} : vector<16x64xf32>, vector<64x32xf32>, vector<16x32xf32> -> vector<16x32xf32>
    %c0_54 = arith.constant 0 : index
    %c0_55 = arith.constant 0 : index
    %137 = vector.load %arg11[%c0_54, %c0_55] : memref<1x32xf32, #tpu.memory_space<vmem>>, vector<1x32xf32>
    %138 = vector.broadcast %137 : vector<1x32xf32> to vector<16x32xf32>
    %139 = arith.addf %136, %138 : vector<16x32xf32>
    %140 = arith.addf %139, %116 : vector<16x32xf32>
    %c0_56 = arith.constant 0 : index
    %c0_57 = arith.constant 0 : index
    %141 = vector.load %arg12[%c0_56, %c0_57] : memref<1x32xf32, #tpu.memory_space<vmem>>, vector<1x32xf32>
    %c0_58 = arith.constant 0 : index
    %c0_59 = arith.constant 0 : index
    %142 = vector.load %arg13[%c0_58, %c0_59] : memref<1x32xf32, #tpu.memory_space<vmem>>, vector<1x32xf32>
    %cst_60 = arith.constant dense<0.000000e+00> : vector<16xf32>
    %143 = vector.multi_reduction <add>, %140, %cst_60 [1] : vector<16x32xf32> to vector<16xf32>
    %144 = vector.shape_cast %143 : vector<16xf32> to vector<16x1xf32>
    %cst_61 = arith.constant 3.200000e+01 : f32
    %145 = vector.broadcast %cst_61 : f32 to vector<16x1xf32>
    %146 = arith.divf %144, %145 : vector<16x1xf32>
    %147 = vector.broadcast %146 : vector<16x1xf32> to vector<16x32xf32>
    %148 = arith.subf %140, %147 : vector<16x32xf32>
    %149 = arith.mulf %148, %148 : vector<16x32xf32>
    %cst_62 = arith.constant dense<0.000000e+00> : vector<16xf32>
    %150 = vector.multi_reduction <add>, %149, %cst_62 [1] : vector<16x32xf32> to vector<16xf32>
    %151 = vector.shape_cast %150 : vector<16xf32> to vector<16x1xf32>
    %cst_63 = arith.constant 3.200000e+01 : f32
    %152 = vector.broadcast %cst_63 : f32 to vector<16x1xf32>
    %153 = arith.divf %151, %152 : vector<16x1xf32>
    %154 = vector.broadcast %146 : vector<16x1xf32> to vector<16x32xf32>
    %155 = arith.subf %140, %154 : vector<16x32xf32>
    %cst_64 = arith.constant 9.99999996E-13 : f32
    %156 = vector.broadcast %cst_64 : f32 to vector<16x1xf32>
    %157 = arith.addf %153, %156 : vector<16x1xf32>
    %158 = math.rsqrt %157 : vector<16x1xf32>
    %159 = vector.broadcast %158 : vector<16x1xf32> to vector<16x32xf32>
    %160 = arith.mulf %155, %159 : vector<16x32xf32>
    %161 = vector.broadcast %141 : vector<1x32xf32> to vector<16x32xf32>
    %162 = arith.mulf %160, %161 : vector<16x32xf32>
    %163 = vector.broadcast %142 : vector<1x32xf32> to vector<16x32xf32>
    %164 = arith.addf %162, %163 : vector<16x32xf32>
    %c0_65 = arith.constant 0 : index
    %c0_66 = arith.constant 0 : index
    %165 = vector.load %arg14[%c0_65, %c0_66] : memref<16x32xf32, #tpu.memory_space<vmem>>, vector<16x32xf32>
    tpu.vector_store %arg14[%c0_65, %c0_66], %164 {strides = array<i32>} : memref<16x32xf32, #tpu.memory_space<vmem>>, vector<16x32xf32>,
    return
  }
}

module attributes {stable_mosaic.version = 11 : i64} {
  func.func @kernel(%arg0: memref<16x32xf32, #tpu.memory_space<vmem>>, %arg1: memref<32x32xf32, #tpu.memory_space<vmem>>, %arg2: memref<1x32xf32, #tpu.memory_space<vmem>>, %arg3: memref<32x4xf32, #tpu.memory_space<vmem>>, %arg4: memref<1x4xf32, #tpu.memory_space<vmem>>, %arg5: memref<2x4xf32, #tpu.memory_space<vmem>>) attributes {dimension_semantics = [], scalar_prefetch = 0 : i64, scratch_operands = 0 : i64, tpu.core_type = #tpu.core_type<tc>} {
    %c0 = arith.constant 0 : index
    %c0_0 = arith.constant 0 : index
    %0 = vector.load %arg0[%c0, %c0_0] : memref<16x32xf32, #tpu.memory_space<vmem>>, vector<1x32xf32>
    %c8 = arith.constant 8 : index
    %c0_1 = arith.constant 0 : index
    %1 = vector.load %arg0[%c8, %c0_1] : memref<16x32xf32, #tpu.memory_space<vmem>>, vector<1x32xf32>
    %2 = tpu.concatenate %0, %1 in 0 : vector<1x32xf32>, vector<1x32xf32> -> vector<2x32xf32>
    %c0_2 = arith.constant 0 : index
    %c0_3 = arith.constant 0 : index
    %3 = vector.load %arg1[%c0_2, %c0_3] : memref<32x32xf32, #tpu.memory_space<vmem>>, vector<32x32xf32>
    %cst = arith.constant dense<0.000000e+00> : vector<2x32xf32>
    %4 = tpu.matmul %2, %3, %cst {dimension_numbers = #tpu.dot_dimension_numbers<[1], [0], [0], [1], [0, 0, 1, 1], [], []>} : vector<2x32xf32>, vector<32x32xf32>, vector<2x32xf32> -> vector<2x32xf32>
    %c0_4 = arith.constant 0 : index
    %c0_5 = arith.constant 0 : index
    %5 = vector.load %arg2[%c0_4, %c0_5] : memref<1x32xf32, #tpu.memory_space<vmem>>, vector<1x32xf32>
    %6 = vector.broadcast %5 : vector<1x32xf32> to vector<2x32xf32>
    %7 = arith.addf %4, %6 : vector<2x32xf32>
    %8 = math.tanh %7 : vector<2x32xf32>
    %c0_6 = arith.constant 0 : index
    %c0_7 = arith.constant 0 : index
    %9 = vector.load %arg3[%c0_6, %c0_7] : memref<32x4xf32, #tpu.memory_space<vmem>>, vector<32x4xf32>
    %cst_8 = arith.constant dense<0.000000e+00> : vector<2x4xf32>
    %10 = tpu.matmul %8, %9, %cst_8 {dimension_numbers = #tpu.dot_dimension_numbers<[1], [0], [0], [1], [0, 0, 1, 1], [], []>} : vector<2x32xf32>, vector<32x4xf32>, vector<2x4xf32> -> vector<2x4xf32>
    %c0_9 = arith.constant 0 : index
    %c0_10 = arith.constant 0 : index
    %11 = vector.load %arg4[%c0_9, %c0_10] : memref<1x4xf32, #tpu.memory_space<vmem>>, vector<1x4xf32>
    %12 = vector.broadcast %11 : vector<1x4xf32> to vector<2x4xf32>
    %13 = arith.addf %10, %12 : vector<2x4xf32>
    %cst_11 = arith.constant dense<0xFF800000> : vector<2xf32>
    %14 = vector.multi_reduction <maximumf>, %13, %cst_11 [1] : vector<2x4xf32> to vector<2xf32>
    %15 = vector.shape_cast %14 : vector<2xf32> to vector<2x1xf32>
    %16 = vector.broadcast %15 : vector<2x1xf32> to vector<2x4xf32>
    %17 = arith.subf %13, %16 : vector<2x4xf32>
    %18 = math.exp %17 : vector<2x4xf32>
    %cst_12 = arith.constant dense<0.000000e+00> : vector<2xf32>
    %19 = vector.multi_reduction <add>, %18, %cst_12 [1] : vector<2x4xf32> to vector<2xf32>
    %20 = vector.shape_cast %19 : vector<2xf32> to vector<2x1xf32>
    %21 = tpu.reciprocal %20 : vector<2x1xf32> -> vector<2x1xf32>
    %22 = vector.broadcast %21 : vector<2x1xf32> to vector<2x4xf32>
    %23 = arith.mulf %18, %22 : vector<2x4xf32>
    %c0_13 = arith.constant 0 : index
    %c0_14 = arith.constant 0 : index
    %24 = vector.load %arg5[%c0_13, %c0_14] : memref<2x4xf32, #tpu.memory_space<vmem>>, vector<2x4xf32>
    tpu.vector_store %arg5[%c0_13, %c0_14], %23 {strides = array<i32>} : memref<2x4xf32, #tpu.memory_space<vmem>>, vector<2x4xf32>,
    return
  }
}

module attributes {stable_mosaic.version = 11 : i64} {
  func.func @_embed_ln_kernel(%arg0: memref<2x8x32xf32, #tpu.memory_space<vmem>>, %arg1: memref<1x8x32xf32, #tpu.memory_space<vmem>>, %arg2: memref<1x1x32xf32, #tpu.memory_space<vmem>>, %arg3: memref<1x1x32xf32, #tpu.memory_space<vmem>>, %arg4: memref<2x8x32xf32, #tpu.memory_space<vmem>>) attributes {dimension_semantics = [], scalar_prefetch = 0 : i64, scratch_operands = 0 : i64, tpu.core_type = #tpu.core_type<tc>} {
    %c0 = arith.constant 0 : index
    %c0_0 = arith.constant 0 : index
    %c0_1 = arith.constant 0 : index
    %0 = vector.load %arg0[%c0, %c0_0, %c0_1] : memref<2x8x32xf32, #tpu.memory_space<vmem>>, vector<2x8x32xf32>
    %c0_2 = arith.constant 0 : index
    %c0_3 = arith.constant 0 : index
    %c0_4 = arith.constant 0 : index
    %1 = vector.load %arg1[%c0_2, %c0_3, %c0_4] : memref<1x8x32xf32, #tpu.memory_space<vmem>>, vector<1x8x32xf32>
    %2 = vector.broadcast %1 : vector<1x8x32xf32> to vector<2x8x32xf32>
    %3 = arith.addf %0, %2 : vector<2x8x32xf32>
    %c0_5 = arith.constant 0 : index
    %c0_6 = arith.constant 0 : index
    %c0_7 = arith.constant 0 : index
    %4 = vector.load %arg2[%c0_5, %c0_6, %c0_7] : memref<1x1x32xf32, #tpu.memory_space<vmem>>, vector<1x1x32xf32>
    %c0_8 = arith.constant 0 : index
    %c0_9 = arith.constant 0 : index
    %c0_10 = arith.constant 0 : index
    %5 = vector.load %arg3[%c0_8, %c0_9, %c0_10] : memref<1x1x32xf32, #tpu.memory_space<vmem>>, vector<1x1x32xf32>
    %cst = arith.constant dense<0.000000e+00> : vector<2x8xf32>
    %6 = vector.multi_reduction <add>, %3, %cst [2] : vector<2x8x32xf32> to vector<2x8xf32>
    %7 = vector.shape_cast %6 : vector<2x8xf32> to vector<2x8x1xf32>
    %cst_11 = arith.constant 3.200000e+01 : f32
    %8 = vector.broadcast %cst_11 : f32 to vector<2x8x1xf32>
    %9 = arith.divf %7, %8 : vector<2x8x1xf32>
    %10 = vector.broadcast %9 : vector<2x8x1xf32> to vector<2x8x32xf32>
    %11 = arith.subf %3, %10 : vector<2x8x32xf32>
    %12 = arith.mulf %11, %11 : vector<2x8x32xf32>
    %cst_12 = arith.constant dense<0.000000e+00> : vector<2x8xf32>
    %13 = vector.multi_reduction <add>, %12, %cst_12 [2] : vector<2x8x32xf32> to vector<2x8xf32>
    %14 = vector.shape_cast %13 : vector<2x8xf32> to vector<2x8x1xf32>
    %cst_13 = arith.constant 3.200000e+01 : f32
    %15 = vector.broadcast %cst_13 : f32 to vector<2x8x1xf32>
    %16 = arith.divf %14, %15 : vector<2x8x1xf32>
    %17 = vector.broadcast %9 : vector<2x8x1xf32> to vector<2x8x32xf32>
    %18 = arith.subf %3, %17 : vector<2x8x32xf32>
    %cst_14 = arith.constant 9.99999996E-13 : f32
    %19 = vector.broadcast %cst_14 : f32 to vector<2x8x1xf32>
    %20 = arith.addf %16, %19 : vector<2x8x1xf32>
    %21 = math.rsqrt %20 : vector<2x8x1xf32>
    %22 = vector.broadcast %21 : vector<2x8x1xf32> to vector<2x8x32xf32>
    %23 = arith.mulf %18, %22 : vector<2x8x32xf32>
    %24 = vector.broadcast %4 : vector<1x1x32xf32> to vector<2x8x32xf32>
    %25 = arith.mulf %23, %24 : vector<2x8x32xf32>
    %26 = vector.broadcast %5 : vector<1x1x32xf32> to vector<2x8x32xf32>
    %27 = arith.addf %25, %26 : vector<2x8x32xf32>
    %c0_15 = arith.constant 0 : index
    %c0_16 = arith.constant 0 : index
    %c0_17 = arith.constant 0 : index
    %28 = vector.load %arg4[%c0_15, %c0_16, %c0_17] : memref<2x8x32xf32, #tpu.memory_space<vmem>>, vector<2x8x32xf32>
    tpu.vector_store %arg4[%c0_15, %c0_16, %c0_17], %27 {strides = array<i32>} : memref<2x8x32xf32, #tpu.memory_space<vmem>>, vector<2x8x32xf32>,
    return
  }
}

</mosaic_0001>

<bundles_post_ra>
// kernel: bert_classifier_forward.4
= control target key start
LH: loop header
LB: loop body
LE: loop exit
PB: predicated region body
PF: predicated region fallthrough
CT: control target
= control target key end

     0   :  { %vm24_vm0 = vcmask 261120   ;;  %s132_s0 = inlined_call_operand.vmem [shape: f32[2,8,32], index: 0, kind: input, shape index: {}]   ;;  %s133_s1 = inlined_call_operand.vmem [shape: f32[1,8,32], index: 1, kind: input, shape index: {}]   ;;  %s134_s2 = inlined_call_operand.vmem [shape: f32[1,1,32], index: 2, kind: input, shape index: {}]   ;;  %s135_s3 = inlined_call_operand.vmem [shape: f32[1,1,32], index: 3, kind: input, shape index: {}]   ;;  %s136_s4 = inlined_call_operand.vmem [shape: f32[2,8,32], index: 4, kind: output, shape index: {}]  }
   0x1   :  { %v17_v0 = vld [vmem:[%s132_s0] sm:$0xff]  ;;  %v18_v2 = vld [vmem:[%s132_s0 + $0x8] sm:$0xff] }
   0x2   :  { %v19_v1 = vld [vmem:[%s133_s1] sm:$0xff] }
   0x3   :  { %v20_v3 = vadd.f32 %v19_v1, %v17_v0  ;;  %v21_v4 = vadd.f32 %v19_v1, %v18_v2  ;;  %v74_v24 = vld [vmem:[%s134_s2] ss:$0 sm:$0xff] }
   0x4   :  { %v75_v26 = vld [vmem:[%s135_s3] ss:$0 sm:$0xff] }
   0x5   :  { %v25_v5 = vsel %vm24_vm0, %v20_v3, 0.0  ;;  %v28_v6 = vsel %vm24_vm0, %v21_v4, 0.0 }
   0x6   :  { %26 = vadd.xlane.f32.xlu0 %v25_v5 }
   0xa   :  { %29 = vadd.xlane.f32.xlu0 %v28_v6 }
  0x8f   :  { %v27_v7 = vpop.xlane.xlu0 %26 }
  0x90   :  { %v32_v8 = vmul.f32 0.03125, %v27_v7 }
  0x92   :  { %v34_v9 = vsub.f32 %v20_v3, %v32_v8 }
  0x93   :  { %v30_v10 = vpop.xlane.xlu0 %29 }
  0x94   :  { %v33_v11 = vmul.f32 0.03125, %v30_v10  ;;  %v36_v12 = vmul.f32 %v34_v9, %v34_v9 }
  0x96   :  { %v35_v13 = vsub.f32 %v21_v4, %v33_v11  ;;  %v38_v14 = vsel %vm24_vm0, %v36_v12, 0.0 }
  0x97   :  { %39 = vadd.xlane.f32.xlu1 %v38_v14 }
  0x98   :  { %v37_v15 = vmul.f32 %v35_v13, %v35_v13 }
  0x9a   :  { %v41_v16 = vsel %vm24_vm0, %v37_v15, 0.0 }
  0x9b   :  { %42 = vadd.xlane.f32.xlu1 %v41_v16 }
 0x120   :  { %v40_v17 = vpop.xlane.xlu1 %39 }
 0x121   :  { %v44_v18 = vmul.f32 0.03125, %v40_v17 }
 0x123   :  { %v46_v19 = vadd.f32 1e-12, %v44_v18 }
 0x124   :  { %v43_v20 = vpop.xlane.xlu1 %42 }
 0x125   :  { %76 = vrsqrt.f32 %v46_v19  ;;  %v45_v21 = vmul.f32 0.03125, %v43_v20 }
 0x127   :  { %v47_v22 = vadd.f32 1e-12, %v45_v21 }
 0x129   :  { %78 = vrsqrt.f32 %v47_v22 }
 0x132   :  { %v77_v23 = vpop.eup %76 }
 0x133   :  { %v50_v25 = vmul.f32 %v77_v23, %v34_v9 }
 0x135   :  { %v58_v27 = vmul.f32 %v74_v24, %v50_v25 }
 0x136   :  { %v79_v28 = vpop.eup %78 }
 0x137   :  { %v66_v29 = vadd.f32 %v75_v26, %v58_v27  ;;  %v51_v30 = vmul.f32 %v79_v28, %v35_v13 }
 0x139   :  { %68 = vst.msk [vmem:[%s136_s4] sm:$0xff] %vm24_vm0, %v66_v29  ;;  %v59_v31 = vmul.f32 %v74_v24, %v51_v30 }
 0x13b   :  { %v67_v32 = vadd.f32 %v75_v26, %v59_v31 }
 0x13d   :  { %69 = vst.msk [vmem:[%s136_s4 + $0x8] sm:$0xff] %vm24_vm0, %v67_v32 }

// kernel: bert_classifier_forward.7
= control target key start
LH: loop header
LB: loop body
LE: loop exit
PB: predicated region body
PF: predicated region fallthrough
CT: control target
= control target key end

     0   :  { %v292_v1 = vmov 0.0   ;;  %vm293_vm0 = vmmov 0   ;;  %s369_s0 = inlined_call_operand.vmem [shape: f32[16,32], index: 0, kind: input, shape index: {}]   ;;  %s370_s1 = inlined_call_operand.vmem [shape: f32[32,32], index: 1, kind: input, shape index: {}]   ;;  %s371_s2 = inlined_call_operand.vmem [shape: f32[1,32], index: 2, kind: input, shape index: {}]   ;;  %s372_s3 = inlined_call_operand.vmem [shape: f32[32,4], index: 3, kind: input, shape index: {}]   ;;  %s373_s4 = inlined_call_operand.vmem [shape: f32[1,4], index: 4, kind: input, shape index: {}]   ;;  %s374_s5 = inlined_call_operand.hbm [shape: f32[2,4], index: 5, kind: output, shape index: {}]  }
   0x1   :  { %v31_v0 = vld [vmem:[%s370_s1 + $0x18] sm:$0xff]  ;;  %239 = vmatprep.subr.mxu0 %v292_v1  ;;  %v30_v2 = vld [vmem:[%s370_s1 + $0x10] sm:$0xff]  ;;  %247 = vmatprep.mubr.msk.f32.mxu0 %vm293_vm0, %v292_v1  ;;  %v22_v3 = vld [vmem:[%s369_s0 + $0x8] sm:$0x1] }
   0x2   :  { %240 = vmatpush3.msra.mxu0 %v31_v0  ;;  %v24_v4 = vrot.slane %v22_v3, 7  ;;  %250 = vmatprep.subr.mxu1 %v292_v1 }
   0x3   :  { %10 = vsyncpa [#allocation3], 0  ;;  %241 = vmatprep.subr.mxu0 %v292_v1  ;;  %v29_v5 = vld [vmem:[%s370_s1 + $0x8] sm:$0xff]  ;;  %v21_v6 = vld [vmem:[%s369_s0] sm:$0x1]  ;;  %vm26_vm1 = vcmask 1040384   ;;  %258 = vmatprep.mubr.msk.f32.mxu1 %vm293_vm0, %v292_v1 }
   0x4   :  { %242 = vmatpush3.msra.mxu0 %v30_v2  ;;  %v28_v7 = vld [vmem:[%s370_s1] sm:$0xff]  ;;  %v27_v8 = vsel %vm26_vm1, %v21_v6, %v24_v4  ;;  %vm39_vm2 = vcmask 261120   ;;  %v117_v9 = vld [vmem:[%s372_s3 + $0x18] sm:$0xff]  ;;  %v116_v10 = vld [vmem:[%s372_s3 + $0x10] sm:$0xff]  ;;  %vm198_vm3 = vcmask 25600  }
   0x5   :  { %243 = vmatprep.subr.mxu0 %v292_v1  ;;  %251 = vmatpush3.msra.mxu1 %v117_v9  ;;  %v115_v11 = vld [vmem:[%s372_s3 + $0x8] sm:$0xff]  ;;  %v114_v12 = vld [vmem:[%s372_s3] sm:$0xff] }
   0x6   :  { %244 = vmatpush3.msra.mxu0 %v29_v5  ;;  %252 = vmatprep.subr.mxu1 %v292_v1  ;;  %v225_v13 = vld [vmem:[%s371_s2] ss:$0 sm:$0xff]  ;;  %s294_s2 = smov [#allocation2]  }
   0x7   :  { %245 = vmatprep.subr.mxu0 %v292_v1  ;;  %253 = vmatpush3.msra.mxu1 %v116_v10  ;;  %v227_v18 = vld [vmem:[%s373_s4] ss:$0 sm:$0xff]  ;;  %s217_s3 = sshll.u32 %s294_s2, 4  ;;  %s218_s3 = int_to_ptr.vmem [resolvable:$true] %s217_s3 }
   0x8   :  { %246 = vmatpush3.msra.mxu0 %v28_v7  ;;  %254 = vmatprep.subr.mxu1 %v292_v1  ;;  %s270_s4 = scalar_lea.vmem %s218_s3, 32  ;;  %p275_p1 = scmp.lt.s32.totalorder %s218_s3, %s218_s3 }
   0x9   :  { %248 = vmatmul.mubr.msk.f32.vlgmr.msra.gmra.mxu0 %vm39_vm2, %v27_v8  ;;  %255 = vmatpush3.msra.mxu1 %v115_v11  ;;  %p271_p0 = scmp.ne.s32.totalorder %s218_s3, %s270_s4  ;;  %p276_p2 = scmp.lt.s32.totalorder %s270_s4, %s270_s4 }
   0xa   :  { %256 = vmatprep.subr.mxu1 %v292_v1 }
   0xb   :  { %257 = vmatpush3.msra.mxu1 %v114_v12  ;;  %p277_p3 = por %p276_p2, %p275_p1 }
   0xd   :  { %p278_p4 = pnand %p277_p3, %p271_p0 }
  0xc9   :  { %v109_v14 = vpop.f32.mrf.mxu0 }
  0xca   :  { %v110_v15 = vadd.f32 %v225_v13, %v109_v14 }
  0xcb   :  { %v249_v16 = vpop.f32.mrf.mxu0 }
  0xcc   :  { %264 = vtanh.f32 %v110_v15 }
  0xd9   :  { %v265_v17 = vpop.eup %264 }
  0xda   :  { %259 = vmatmul.mubr.msk.f32.vlgmr.msra.gmra.mxu1 %vm39_vm2, %v265_v17 }
 0x19a   :  { %v194_v19 = vpop.f32.mrf.mxu1 }
 0x19b   :  { %v195_v20 = vadd.f32 %v227_v18, %v194_v19 }
 0x19c   :  { %v260_v21 = vpop.f32.mrf.mxu1 }
 0x19d   :  { %v199_v22 = vsel %vm198_vm3, %v195_v20, -inf }
 0x19e   :  { %200 = vmax.xlane.f32.xlu0 %v199_v22 }
 0x227   :  { %v201_v23 = vpop.xlane.xlu0 %200 }
 0x228   :  { %v202_v24 = vsub.f32 %v195_v20, %v201_v23 }
 0x22a   :  { %v203_v25 = vmul.f32 1.442695, %v202_v24 }
 0x22c   :  { %266 = vpow2.f32 %v203_v25 }
 0x239   :  { %v267_v26 = vpop.eup %266 }
 0x23a   :  { %v205_v27 = vsel %vm198_vm3, %v267_v26, 0.0 }
 0x23b   :  { %206 = vadd.xlane.f32.xlu0 %v205_v27 }
 0x2c4   :  { %v207_v28 = vpop.xlane.xlu0 %206 }
 0x2c5   :  { %268 = vrcp.f32 %v207_v28 }
 0x2d2   :  { %v269_v29 = vpop.eup %268 }
 0x2d3   :  { %v209_v30 = vmul.f32 %v269_v29, %v267_v26 }
 0x2d5   :  { %210 = vst.msk [vmem:[#allocation2] sm:$0x3] %vm198_vm3, %v209_v30 }
 0x2d6   :  { %281 = shalt.err (!%p278_p4)
}
 0x2d7   :  { %220 = dma.vmem_to_hbm [thread:$0]  %s218_s3, 32, %s374_s5, [#allocation3]  }
 0x2d8   :  { %290 = dma.done.wait [#allocation3], 32  }
 0x2d9   :  { %291 = vsyncadd [#allocation3], 4294967264 }
 0x2da   :  { %224 = vsyncpa [#allocation3], 1 }

// kernel: bert_classifier_forward.5
= control target key start
LH: loop header
LB: loop body
LE: loop exit
PB: predicated region body
PF: predicated region fallthrough
CT: control target
= control target key end

     0   :  { %vm60_vm0 = vcmask 261120   ;;  %v1430_v6 = vmov 0.0   ;;  %vm1431_vm1 = vmmov 0   ;;  %s1432_s25 = smov 112   ;;  %s1433_s26 = smov 96   ;;  %vm146_vm2 = vcmask 130048   ;;  %s1707_s2 = inlined_call_operand.vmem [shape: f32[32,96], index: 2, kind: input, shape index: {}]   ;;  %s1708_s0 = inlined_call_operand.vmem [shape: f32[16,32], index: 0, kind: input, shape index: {}]   ;;  %s1709_s3 = inlined_call_operand.vmem [shape: f32[1,96], index: 3, kind: input, shape index: {}]   ;;  %s1710_s1 = inlined_call_operand.vmem [shape: f32[2,8], index: 1, kind: input, shape index: {}]   ;;  %s1711_s4 = inlined_call_operand.vmem [shape: f32[32,32], index: 4, kind: input, shape index: {}]   ;;  %s1712_s5 = inlined_call_operand.vmem [shape: f32[1,32], index: 5, kind: input, shape index: {}]   ;;  %s1713_s8 = inlined_call_operand.vmem [shape: f32[32,64], index: 8, kind: input, shape index: {}]   ;;  %s1714_s6 = inlined_call_operand.vmem [shape: f32[1,32], index: 6, kind: input, shape index: {}]   ;;  %s1715_s7 = inlined_call_operand.vmem [shape: f32[1,32], index: 7, kind: input, shape index: {}]   ;;  %s1716_s10 = inlined_call_operand.vmem [shape: f32[64,32], index: 10, kind: input, shape index: {}]   ;;  %s1717_s9 = inlined_call_operand.vmem [shape: f32[1,64], index: 9, kind: input, shape index: {}]   ;;  %s1718_s11 = inlined_call_operand.vmem [shape: f32[1,32], index: 11, kind: input, shape index: {}]   ;;  %s1719_s12 = inlined_call_operand.vmem [shape: f32[1,32], index: 12, kind: input, shape index: {}]   ;;  %s1720_s13 = inlined_call_operand.vmem [shape: f32[1,32], index: 13, kind: input, shape index: {}]   ;;  %s1721_s14 = inlined_call_operand.vmem [shape: f32[16,32], index: 14, kind: output, shape index: {}]  }
   0x1   :  { %v52_v0 = vld [vmem:[%s1707_s2 + $0x18] sm:$0xff]  ;;  %v51_v1 = vld [vmem:[%s1707_s2 + $0x10] sm:$0xff]  ;;  %v1522_v2 = vld [vmem:[%s1708_s0] sm:$0xff]  ;;  %1323 = vmatprep.subr.mxu0 %v1430_v6  ;;  %1325 = vmatprep.mubr.msk.f32.mxu0 %vm1431_vm1, %v1430_v6  ;;  %s1434_s27 = smov 80   ;;  %vm227_vm3 = vcmask 64512   ;;  %s1435_s15 = smov 64  }
   0x2   :  { %1302 = vmatprep.subr.mxu1 %v52_v0  ;;  %v50_v3 = vld [vmem:[%s1707_s2 + $0x8] sm:$0xff]  ;;  %1310 = vmatprep.mubr.msk.f32.mxu1 %vm60_vm0, %v1522_v2  ;;  %v49_v4 = vld [vmem:[%s1707_s2] sm:$0xff]  ;;  %s1437_s24 = smov 16   ;;  %vm1094_vm4 = vcmask 523264  }
   0x3   :  { %1303 = vmatpush3.msra.mxu1 %v52_v0  ;;  %v1535_v5 = vld [vmem:[%s1708_s0 + $0x8] sm:$0xff]  ;;  %v1228_v8 = vld [vmem:[%s1709_s3] ss:$0 sm:$0xff]  ;;  %v1240_v29 = vld [vmem:[%s1710_s1 + $0x1] ss:$0 sm:$0xff] }
   0x4   :  { %1304 = vmatprep.subr.mxu1 %v51_v1  ;;  %v1233_v19 = vld [vmem:[%s1710_s1] ss:$0 sm:$0xff]  ;;  %s1436_s1 = smov 48  }
   0x5   :  { %1305 = vmatpush3.msra.mxu1 %v51_v1 }
   0x6   :  { %1306 = vmatprep.subr.mxu1 %v50_v3 }
   0x7   :  { %1307 = vmatpush3.msra.mxu1 %v50_v3 }
   0x8   :  { %1308 = vmatprep.subr.mxu1 %v49_v4 }
   0x9   :  { %1309 = vmatpush3.msra.mxu1 %v49_v4 }
   0xa   :  { %1311 = vmatmul.mubr.msk.f32.vlgmr.msra.gmra.mxu1 %vm60_vm0, %v1535_v5  ;;  %1313 = vmatprep.subr.mxu1 %v1430_v6 }
   0xb   :  { %1315 = vmatprep.mubr.msk.f32.mxu1 %vm1431_vm1, %v1430_v6 }
  0xca   :  { %v1312_v7 = vpop.f32.mrf.mxu1 }
  0xcb   :  { %v1552_v11 = vadd.f32 %v1312_v7, %v1228_v8 }
  0xcc   :  { %v133_v9 = vpop.f32.mrf.mxu1 }
  0xcd   :  { %v1548_v10 = vadd.f32 %v1228_v8, %v133_v9 }
  0xcf   :  { %315 = vrot.lane.b32.xlu1 %v1548_v10, %s1432_s25  ;;  %144 = vrot.lane.b32.xlu0 %v1548_v10, %s1433_s26 }
  0xd3   :  { %489 = vrot.lane.b32.xlu1 %v1552_v11, %s1433_s26  ;;  %317 = vrot.lane.b32.xlu0 %v1548_v10, %s1434_s27 }
  0xd7   :  { %658 = vrot.lane.b32.xlu1 %v1552_v11, %s1432_s25  ;;  %660 = vrot.lane.b32.xlu0 %v1552_v11, %s1434_s27 }
 0x141   :  { %v145_v12 = vpop.permute.xlu0 %144  ;;  %v316_v13 = vpop.permute.xlu1 %315 }
 0x142   :  { %1314 = vmatpush3.xpose.msk.msra.mxu1 %vm146_vm2, %v145_v12 }
 0x143   :  { %1318 = vmatprep.subr.mxu1 %v1430_v6 }
 0x145   :  { %1316 = vmatmul.mubr.msk.f32.vlgmr.msra.gmra.mxu1 %vm146_vm2, %v1548_v10  ;;  %v318_v14 = vpop.permute.xlu0 %317  ;;  %v490_v15 = vpop.permute.xlu1 %489 }
 0x146   :  { %1324 = vmatpush3.xpose.msk.msra.mxu0 %vm146_vm2, %v318_v14  ;;  %1320 = vmatprep.mubr.msk.f32.mxu1 %vm1431_vm1, %v1430_v6 }
 0x147   :  { %1333 = vmatprep.subr.mxu0 %v1430_v6 }
 0x149   :  { %1326 = vmatmul.mubr.msk.f32.vlgmr.msra.gmra.mxu0 %vm146_vm2, %v316_v13  ;;  %v661_v16 = vpop.permute.xlu0 %660  ;;  %v659_v17 = vpop.permute.xlu1 %658 }
 0x14a   :  { %1334 = vmatpush3.xpose.msk.msra.mxu0 %vm146_vm2, %v490_v15  ;;  %1335 = vmatprep.mubr.msk.f32.mxu0 %vm1431_vm1, %v1430_v6  ;;  %v833_v15 = vld [vmem:[%s1711_s4 + $0x18] sm:$0xff] }
 0x14b   :  { %1343 = vmatprep.subr.mxu0 %v1430_v6 }
 0x14d   :  { %1336 = vmatmul.mubr.msk.f32.vlgmr.msra.gmra.mxu0 %vm146_vm2, %v1552_v11 }
 0x14e   :  { %1344 = vmatpush3.xpose.msk.msra.mxu0 %vm146_vm2, %v661_v16  ;;  %1345 = vmatprep.mubr.msk.f32.mxu0 %vm1431_vm1, %v1430_v6  ;;  %v832_v16 = vld [vmem:[%s1711_s4 + $0x10] sm:$0xff] }
 0x14f   :  { %1353 = vmatprep.subr.mxu0 %v833_v15 }
 0x151   :  { %1346 = vmatmul.mubr.msk.f32.vlgmr.msra.gmra.mxu0 %vm146_vm2, %v659_v17  ;;  %v831_v17 = vld [vmem:[%s1711_s4 + $0x8] sm:$0xff] }
 0x152   :  { %1354 = vmatpush3.msra.mxu0 %v833_v15 }
 0x153   :  { %1355 = vmatprep.subr.mxu0 %v832_v16 }
 0x154   :  { %1356 = vmatpush3.msra.mxu0 %v832_v16 }
 0x155   :  { %1357 = vmatprep.subr.mxu0 %v831_v17 }
 0x156   :  { %1358 = vmatpush3.msra.mxu0 %v831_v17 }
 0x205   :  { %v217_v18 = vpop.f32.mrf.mxu1 }
 0x206   :  { %v221_v20 = vmul.f32 0.25, %v217_v18 }
 0x207   :  { %v1317_v21 = vpop.f32.mrf.mxu1 }
 0x208   :  { %v226_v22 = vadd.f32 %v1233_v19, %v221_v20 }
 0x209   :  { %v389_v23 = vpop.f32.mrf.mxu0 }
 0x20a   :  { %v393_v24 = vmul.f32 0.25, %v389_v23  ;;  %v228_v25 = vsel %vm227_vm3, %v226_v22, -inf }
 0x20b   :  { %229 = vmax.xlane.f32.xlu0 %v228_v25  ;;  %v1327_v26 = vpop.f32.mrf.mxu0 }
 0x20c   :  { %v394_v27 = vadd.f32 %v1233_v19, %v393_v24 }
 0x20d   :  { %v561_v28 = vpop.f32.mrf.mxu0 }
 0x20e   :  { %v565_v30 = vmul.f32 0.25, %v561_v28  ;;  %v395_v31 = vsel %vm227_vm3, %v394_v27, -inf }
 0x20f   :  { %396 = vmax.xlane.f32.xlu1 %v395_v31  ;;  %v1337_v32 = vpop.f32.mrf.mxu0 }
 0x210   :  { %v570_v33 = vadd.f32 %v1240_v29, %v565_v30  ;;  %v1245_v30 = vld [vmem:[%s1712_s5] ss:$0 sm:$0xff] }
 0x211   :  { %v732_v34 = vpop.f32.mrf.mxu0 }
 0x212   :  { %v736_v35 = vmul.f32 0.25, %v732_v34  ;;  %v571_v36 = vsel %vm227_vm3, %v570_v33, -inf }
 0x213   :  { %572 = vmax.xlane.f32.xlu0 %v571_v36  ;;  %v1347_v37 = vpop.f32.mrf.mxu0 }
 0x214   :  { %v737_v38 = vadd.f32 %v1240_v29, %v736_v35 }
 0x216   :  { %v738_v39 = vsel %vm227_vm3, %v737_v38, -inf }
 0x217   :  { %739 = vmax.xlane.f32.xlu0 %v738_v39 }
 0x220   :  { %239 = vrot.lane.b32.xlu1 %v1548_v10, %s1435_s15 }
 0x294   :  { %v230_v40 = vpop.xlane.xlu0 %229 }
 0x295   :  { %v231_v41 = vsub.f32 %v226_v22, %v230_v40 }
 0x297   :  { %v232_v42 = vmul.f32 1.442695, %v231_v41 }
 0x298   :  { %v397_v43 = vpop.xlane.xlu1 %396 }
 0x299   :  { %1402 = vpow2.f32 %v232_v42  ;;  %v398_v44 = vsub.f32 %v394_v27, %v397_v43 }
 0x29b   :  { %v399_v45 = vmul.f32 1.442695, %v398_v44 }
 0x29c   :  { %v240_v46 = vpop.permute.xlu1 %239  ;;  %v573_v47 = vpop.xlane.xlu0 %572 }
 0x29d   :  { %1404 = vpow2.f32 %v399_v45  ;;  %v574_v48 = vsub.f32 %v570_v33, %v573_v47  ;;  %1319 = vmatpush3.msra.mxu1 %v240_v46 }
 0x29e   :  { %1328 = vmatprep.subr.mxu1 %v1430_v6 }
 0x29f   :  { %v575_v49 = vmul.f32 1.442695, %v574_v48  ;;  %v971_v48 = vld [vmem:[%s1713_s8 + $0x10] sm:$0xff] }
 0x2a0   :  { %v740_v50 = vpop.xlane.xlu0 %739 }
 0x2a1   :  { %1406 = vpow2.f32 %v575_v49  ;;  %v741_v51 = vsub.f32 %v737_v38, %v740_v50  ;;  %v970_v49 = vld [vmem:[%s1713_s8 + $0x8] sm:$0xff]  ;;  %v969_v50 = vld [vmem:[%s1713_s8] sm:$0xff] }
 0x2a3   :  { %v742_v52 = vmul.f32 1.442695, %v741_v51 }
 0x2a5   :  { %1408 = vpow2.f32 %v742_v52 }
 0x2a6   :  { %v1403_v53 = vpop.eup %1402 }
 0x2a7   :  { %v234_v54 = vsel %vm227_vm3, %v1403_v53, 0.0 }
 0x2a8   :  { %235 = vadd.xlane.f32.xlu1 %v234_v54 }
 0x2aa   :  { %v1405_v55 = vpop.eup %1404 }
 0x2ab   :  { %v401_v56 = vsel %vm227_vm3, %v1405_v55, 0.0 }
 0x2ac   :  { %402 = vadd.xlane.f32.xlu0 %v401_v56 }
 0x2ae   :  { %v1407_v57 = vpop.eup %1406 }
 0x2af   :  { %v577_v58 = vsel %vm227_vm3, %v1407_v57, 0.0 }
 0x2b0   :  { %578 = vadd.xlane.f32.xlu1 %v577_v58  ;;  %v1248_v58 = vld [vmem:[%s1714_s6] ss:$0 sm:$0xff] }
 0x2b2   :  { %v1409_v59 = vpop.eup %1408 }
 0x2b3   :  { %v744_v60 = vsel %vm227_vm3, %v1409_v59, 0.0 }
 0x2b4   :  { %745 = vadd.xlane.f32.xlu0 %v744_v60  ;;  %v1249_v60 = vld [vmem:[%s1715_s7] ss:$0 sm:$0xff] }
 0x2c1   :  { %582 = vrot.lane.b32.xlu1 %v1552_v11, %s1435_s15 }
 0x2c5   :  { %749 = vrot.lane.b32.xlu1 %v1552_v11, %s1436_s1 }
 0x2ca   :  { %406 = vrot.lane.b32.xlu0 %v1548_v10, %s1436_s1 }
 0x331   :  { %v236_v61 = vpop.xlane.xlu1 %235 }
 0x332   :  { %1410 = vrcp.f32 %v236_v61 }
 0x335   :  { %v403_v62 = vpop.xlane.xlu0 %402 }
 0x336   :  { %1412 = vrcp.f32 %v403_v62 }
 0x339   :  { %v579_v63 = vpop.xlane.xlu1 %578 }
 0x33a   :  { %1414 = vrcp.f32 %v579_v63 }
 0x33d   :  { %v746_v0 = vpop.xlane.xlu0 %745  ;;  %v583_v8 = vpop.permute.xlu1 %582 }
 0x33e   :  { %1416 = vrcp.f32 %v746_v0 }
 0x33f   :  { %v1411_v1 = vpop.eup %1410 }
 0x340   :  { %v238_v3 = vmul.f32 %v1411_v1, %v1403_v53 }
 0x341   :  { %v407_v4 = vpop.permute.xlu0 %406  ;;  %v750_v12 = vpop.permute.xlu1 %749 }
 0x342   :  { %1321 = vmatmul.mubr.msk.f32.vlgmr.msra.gmra.mxu1 %vm227_vm3, %v238_v3 }
 0x343   :  { %v1413_v7 = vpop.eup %1412  ;;  %1329 = vmatpush3.msra.mxu1 %v407_v4  ;;  %1330 = vmatprep.mubr.msk.f32.mxu1 %vm1431_vm1, %v1430_v6  ;;  %v1086_v4 = vld [vmem:[%s1716_s10 + $0x38] sm:$0xff] }
 0x344   :  { %1338 = vmatprep.subr.mxu1 %v1430_v6  ;;  %v405_v9 = vmul.f32 %v1413_v7, %v1405_v55  ;;  %v1085_v7 = vld [vmem:[%s1716_s10 + $0x30] sm:$0xff] }
 0x346   :  { %1331 = vmatmul.mubr.msk.f32.vlgmr.msra.gmra.mxu1 %vm227_vm3, %v405_v9  ;;  %v1083_v9 = vld [vmem:[%s1716_s10 + $0x20] sm:$0xff] }
 0x347   :  { %v1415_v10 = vpop.eup %1414  ;;  %1339 = vmatpush3.msra.mxu1 %v583_v8  ;;  %1340 = vmatprep.mubr.msk.f32.mxu1 %vm1431_vm1, %v1430_v6  ;;  %v1084_v8 = vld [vmem:[%s1716_s10 + $0x28] sm:$0xff] }
 0x348   :  { %1348 = vmatprep.subr.mxu1 %v1430_v6  ;;  %v581_v11 = vmul.f32 %v1415_v10, %v1407_v57  ;;  %v1082_v10 = vld [vmem:[%s1716_s10 + $0x18] sm:$0xff] }
 0x34a   :  { %1341 = vmatmul.mubr.msk.f32.vlgmr.msra.gmra.mxu1 %vm227_vm3, %v581_v11  ;;  %v1081_v11 = vld [vmem:[%s1716_s10 + $0x10] sm:$0xff] }
 0x34b   :  { %v1417_v13 = vpop.eup %1416  ;;  %1349 = vmatpush3.msra.mxu1 %v750_v12  ;;  %1350 = vmatprep.mubr.msk.f32.mxu1 %vm1431_vm1, %v1430_v6  ;;  %v830_v6 = vld [vmem:[%s1711_s4] sm:$0xff]  ;;  %v1080_v12 = vld [vmem:[%s1716_s10 + $0x8] sm:$0xff] }
 0x34c   :  { %v748_v14 = vmul.f32 %v1417_v13, %v1409_v59  ;;  %1359 = vmatprep.subr.mxu0 %v830_v6  ;;  %v1079_v13 = vld [vmem:[%s1716_s10] sm:$0xff] }
 0x34d   :  { %1360 = vmatpush3.msra.mxu0 %v830_v6 }
 0x34e   :  { %1351 = vmatmul.mubr.msk.f32.vlgmr.msra.gmra.mxu1 %vm227_vm3, %v748_v14  ;;  %1375 = vmatprep.subr.mxu0 %v1086_v4  ;;  %v1250_v14 = vld [vmem:[%s1717_s9] ss:$0 sm:$0xff] }
 0x402   :  { %v311_v18 = vpop.f32.mrf.mxu1 }
 0x404   :  { %v1322_v19 = vpop.f32.mrf.mxu1 }
 0x406   :  { %v478_v20 = vpop.f32.mrf.mxu1 }
 0x407   :  { %483 = vrot.lane.b32.xlu0 %v478_v20, %s1437_s24 }
 0x408   :  { %v1332_v21 = vpop.f32.mrf.mxu1 }
 0x40a   :  { %v654_v22 = vpop.f32.mrf.mxu1 }
 0x40c   :  { %v1342_v23 = vpop.f32.mrf.mxu1 }
 0x40e   :  { %v821_v24 = vpop.f32.mrf.mxu1 }
 0x40f   :  { %826 = vrot.lane.b32.xlu1 %v821_v24, %s1437_s24 }
 0x410   :  { %v1352_v25 = vpop.f32.mrf.mxu1 }
 0x479   :  { %v484_v26 = vpop.permute.xlu0 %483 }
 0x47a   :  { %v486_v27 = vsel %vm146_vm2, %v311_v18, %v484_v26 }
 0x47b   :  { %1361 = vmatprep.mubr.msk.f32.mxu0 %vm60_vm0, %v486_v27 }
 0x481   :  { %v827_v28 = vpop.permute.xlu1 %826 }
 0x482   :  { %v829_v29 = vsel %vm146_vm2, %v654_v22, %v827_v28 }
 0x483   :  { %1362 = vmatmul.mubr.msk.f32.vlgmr.msra.gmra.mxu0 %vm60_vm0, %v829_v29 }
 0x484   :  { %1376 = vmatpush3.msra.mxu0 %v1086_v4 }
 0x485   :  { %1377 = vmatprep.subr.mxu0 %v1085_v7 }
 0x486   :  { %1378 = vmatpush3.msra.mxu0 %v1085_v7 }
 0x487   :  { %1379 = vmatprep.subr.mxu0 %v1084_v8 }
 0x488   :  { %1380 = vmatpush3.msra.mxu0 %v1084_v8 }
 0x489   :  { %1381 = vmatprep.subr.mxu0 %v1083_v9 }
 0x48a   :  { %1382 = vmatpush3.msra.mxu0 %v1083_v9 }
 0x48b   :  { %1383 = vmatprep.subr.mxu0 %v1082_v10 }
 0x48c   :  { %1384 = vmatpush3.msra.mxu0 %v1082_v10 }
 0x48d   :  { %1385 = vmatprep.subr.mxu0 %v1081_v11 }
 0x48e   :  { %1386 = vmatpush3.msra.mxu0 %v1081_v11 }
 0x48f   :  { %1387 = vmatprep.subr.mxu0 %v1080_v12 }
 0x490   :  { %1388 = vmatpush3.msra.mxu0 %v1080_v12 }
 0x491   :  { %1389 = vmatprep.subr.mxu0 %v1079_v13 }
 0x492   :  { %1390 = vmatpush3.msra.mxu0 %v1079_v13 }
 0x543   :  { %v1363_v31 = vpop.f32.mrf.mxu0 }
 0x544   :  { %v919_v32 = vadd.f32 %v1363_v31, %v1245_v30 }
 0x545   :  { %v913_v33 = vpop.f32.mrf.mxu0 }
 0x546   :  { %v914_v34 = vadd.f32 %v1245_v30, %v913_v33  ;;  %v923_v35 = vadd.f32 %v919_v32, %v1535_v5 }
 0x548   :  { %v929_v36 = vsel %vm60_vm0, %v923_v35, 0.0  ;;  %v922_v37 = vadd.f32 %v914_v34, %v1522_v2  ;;  %v972_v2 = vld [vmem:[%s1713_s8 + $0x18] sm:$0xff] }
 0x549   :  { %930 = vadd.xlane.f32.xlu1 %v929_v36  ;;  %1364 = vmatprep.subr.mxu1 %v972_v2  ;;  %v1253_v36 = vld [vmem:[%s1718_s11] ss:$0 sm:$0xff] }
 0x54a   :  { %v926_v38 = vsel %vm60_vm0, %v922_v37, 0.0  ;;  %1365 = vmatpush3.msra.mxu1 %v972_v2 }
 0x54b   :  { %927 = vadd.xlane.f32.xlu0 %v926_v38  ;;  %1366 = vmatprep.subr.mxu1 %v971_v48 }
 0x54c   :  { %1367 = vmatpush3.msra.mxu1 %v971_v48 }
 0x54d   :  { %1368 = vmatprep.subr.mxu1 %v970_v49 }
 0x54e   :  { %1369 = vmatpush3.msra.mxu1 %v970_v49 }
 0x54f   :  { %1370 = vmatprep.subr.mxu1 %v969_v50 }
 0x550   :  { %1371 = vmatpush3.msra.mxu1 %v969_v50 }
 0x5d2   :  { %v931_v39 = vpop.xlane.xlu1 %930 }
 0x5d3   :  { %v934_v40 = vmul.f32 0.03125, %v931_v39 }
 0x5d4   :  { %v928_v41 = vpop.xlane.xlu0 %927 }
 0x5d5   :  { %v933_v42 = vmul.f32 0.03125, %v928_v41  ;;  %v936_v43 = vsub.f32 %v923_v35, %v934_v40 }
 0x5d7   :  { %v935_v44 = vsub.f32 %v922_v37, %v933_v42  ;;  %v938_v47 = vmul.f32 %v936_v43, %v936_v43 }
 0x5d9   :  { %v937_v45 = vmul.f32 %v935_v44, %v935_v44  ;;  %v942_v5 = vsel %vm60_vm0, %v938_v47, 0.0 }
 0x5db   :  { %v939_v46 = vsel %vm60_vm0, %v937_v45, 0.0 }
 0x5dc   :  { %940 = vadd.xlane.f32.xlu0 %v939_v46 }
 0x5e0   :  { %943 = vadd.xlane.f32.xlu0 %v942_v5 }
 0x665   :  { %v941_v51 = vpop.xlane.xlu0 %940 }
 0x666   :  { %v945_v52 = vmul.f32 0.03125, %v941_v51 }
 0x668   :  { %v947_v53 = vadd.f32 1e-12, %v945_v52 }
 0x669   :  { %v944_v54 = vpop.xlane.xlu0 %943 }
 0x66a   :  { %1418 = vrsqrt.f32 %v947_v53  ;;  %v946_v55 = vmul.f32 0.03125, %v944_v54 }
 0x66c   :  { %v948_v56 = vadd.f32 1e-12, %v946_v55 }
 0x66e   :  { %1420 = vrsqrt.f32 %v948_v56 }
 0x677   :  { %v1419_v57 = vpop.eup %1418 }
 0x678   :  { %v951_v59 = vmul.f32 %v1419_v57, %v935_v44 }
 0x67a   :  { %v959_v61 = vmul.f32 %v1248_v58, %v951_v59 }
 0x67b   :  { %v1421_v62 = vpop.eup %1420 }
 0x67c   :  { %v952_v63 = vmul.f32 %v1421_v62, %v936_v43  ;;  %v1653_v0 = vadd.f32 %v1249_v60, %v959_v61 }
 0x67e   :  { %v960_v1 = vmul.f32 %v1248_v58, %v952_v63  ;;  %1372 = vmatprep.mubr.msk.f32.mxu1 %vm60_vm0, %v1653_v0  ;;  %v1257_v63 = vld [vmem:[%s1720_s13] ss:$0 sm:$0xff] }
 0x680   :  { %v968_v3 = vadd.f32 %v1249_v60, %v960_v1  ;;  %v1256_v60 = vld [vmem:[%s1719_s12] ss:$0 sm:$0xff] }
 0x682   :  { %1373 = vmatmul.mubr.msk.f32.vlgmr.msra.gmra.mxu1 %vm60_vm0, %v968_v3 }
 0x742   :  { %v1374_v15 = vpop.f32.mrf.mxu1 }
 0x743   :  { %v1058_v16 = vadd.f32 %v1374_v15, %v1250_v14 }
 0x744   :  { %v1052_v17 = vpop.f32.mrf.mxu1 }
 0x745   :  { %v1064_v6 = vmul.f32 0.044715, %v1058_v16  ;;  %v1053_v18 = vadd.f32 %v1250_v14, %v1052_v17  ;;  %v1062_v33 = vmul.f32 0.5, %v1058_v16 }
 0x747   :  { %v1066_v19 = vmul.f32 %v1064_v6, %v1058_v16  ;;  %v1063_v20 = vmul.f32 0.044715, %v1053_v18  ;;  %v1061_v31 = vmul.f32 0.5, %v1053_v18 }
 0x749   :  { %v1068_v21 = vmul.f32 %v1066_v19, %v1058_v16  ;;  %v1065_v22 = vmul.f32 %v1063_v20, %v1053_v18 }
 0x74b   :  { %v1070_v23 = vadd.f32 %v1068_v21, %v1058_v16  ;;  %v1067_v24 = vmul.f32 %v1065_v22, %v1053_v18 }
 0x74d   :  { %v1072_v25 = vmul.f32 0.7978846, %v1070_v23  ;;  %v1069_v26 = vadd.f32 %v1067_v24, %v1053_v18 }
 0x74f   :  { %1422 = vtanh.f32 %v1072_v25  ;;  %v1071_v27 = vmul.f32 0.7978846, %v1069_v26 }
 0x751   :  { %1424 = vtanh.f32 %v1071_v27 }
 0x75c   :  { %v1423_v28 = vpop.eup %1422 }
 0x75d   :  { %v1076_v30 = vadd.f32 1.0, %v1423_v28 }
 0x75e   :  { %v1425_v29 = vpop.eup %1424 }
 0x75f   :  { %v1075_v32 = vadd.f32 1.0, %v1425_v29  ;;  %v1078_v35 = vmul.f32 %v1076_v30, %v1062_v33 }
 0x761   :  { %v1077_v34 = vmul.f32 %v1075_v32, %v1061_v31 }
 0x763   :  { %1391 = vmatprep.mubr.msk.f32.mxu0 %vm1094_vm4, %v1077_v34 }
 0x764   :  { %1392 = vmatmul.mubr.msk.f32.vlgmr.msra.gmra.mxu0 %vm1094_vm4, %v1078_v35 }
 0x824   :  { %v1393_v37 = vpop.f32.mrf.mxu0 }
 0x825   :  { %v1173_v38 = vadd.f32 %v1393_v37, %v1253_v36 }
 0x826   :  { %v1167_v39 = vpop.f32.mrf.mxu0 }
 0x827   :  { %v1168_v40 = vadd.f32 %v1253_v36, %v1167_v39  ;;  %v1177_v41 = vadd.f32 %v1173_v38, %v968_v3 }
 0x829   :  { %v1183_v42 = vsel %vm60_vm0, %v1177_v41, 0.0  ;;  %v1176_v43 = vadd.f32 %v1168_v40, %v1653_v0 }
 0x82a   :  { %1184 = vadd.xlane.f32.xlu0 %v1183_v42 }
 0x82b   :  { %v1180_v44 = vsel %vm60_vm0, %v1176_v43, 0.0 }
 0x82c   :  { %1181 = vadd.xlane.f32.xlu1 %v1180_v44 }
 0x8b3   :  { %v1185_v45 = vpop.xlane.xlu0 %1184 }
 0x8b4   :  { %v1187_v46 = vmul.f32 0.03125, %v1185_v45 }
 0x8b5   :  { %v1182_v47 = vpop.xlane.xlu1 %1181 }
 0x8b6   :  { %v1189_v5 = vsub.f32 %v1177_v41, %v1187_v46  ;;  %v1186_v2 = vmul.f32 0.03125, %v1182_v47 }
 0x8b8   :  { %v1188_v48 = vsub.f32 %v1176_v43, %v1186_v2  ;;  %v1191_v49 = vmul.f32 %v1189_v5, %v1189_v5 }
 0x8ba   :  { %v1195_v50 = vsel %vm60_vm0, %v1191_v49, 0.0  ;;  %v1190_v51 = vmul.f32 %v1188_v48, %v1188_v48 }
 0x8bb   :  { %1196 = vadd.xlane.f32.xlu0 %v1195_v50 }
 0x8bc   :  { %v1192_v52 = vsel %vm60_vm0, %v1190_v51, 0.0 }
 0x8bd   :  { %1193 = vadd.xlane.f32.xlu1 %v1192_v52 }
 0x944   :  { %v1197_v53 = vpop.xlane.xlu0 %1196 }
 0x945   :  { %v1199_v54 = vmul.f32 0.03125, %v1197_v53 }
 0x946   :  { %v1194_v55 = vpop.xlane.xlu1 %1193 }
 0x947   :  { %v1201_v56 = vadd.f32 1e-12, %v1199_v54  ;;  %v1198_v57 = vmul.f32 0.03125, %v1194_v55 }
 0x949   :  { %1426 = vrsqrt.f32 %v1201_v56  ;;  %v1200_v58 = vadd.f32 1e-12, %v1198_v57 }
 0x94b   :  { %1428 = vrsqrt.f32 %v1200_v58 }
 0x956   :  { %v1427_v59 = vpop.eup %1426 }
 0x957   :  { %v1205_v61 = vmul.f32 %v1427_v59, %v1189_v5 }
 0x958   :  { %v1429_v62 = vpop.eup %1428 }
 0x959   :  { %v1213_v0 = vmul.f32 %v1256_v60, %v1205_v61  ;;  %v1204_v1 = vmul.f32 %v1429_v62, %v1188_v48 }
 0x95b   :  { %v1221_v3 = vadd.f32 %v1257_v63, %v1213_v0  ;;  %v1212_v4 = vmul.f32 %v1256_v60, %v1204_v1 }
 0x95d   :  { %1223 = vst.msk [vmem:[%s1721_s14 + $0x8] sm:$0xff] %vm60_vm0, %v1221_v3  ;;  %v1220_v7 = vadd.f32 %v1257_v63, %v1212_v4 }
 0x95f   :  { %1222 = vst.msk [vmem:[%s1721_s14] sm:$0xff] %vm60_vm0, %v1220_v7 }

</bundles_post_ra>
